<compile_context>
chip_gen: v5e
topology: v5e:2x2
jax: 0.10.0
libtpu: 0.0.40
codegen_flags: <defaults>
</compile_context>

<pallas_src>
import jax
import jax.numpy as jnp
from jax.experimental import pallas as pl
from jax.experimental.pallas import tpu as pltpu

N_HIDDENS = 16  # ChannelAttention default


def _sigmoid(v):
    return 1.0 / (1.0 + jnp.exp(-v))


def channel_attention_kernel(x_ref, w1t_ref, w2_ref, o_ref):
    # x_ref : (Bb, C*HW)  one row per batch element, channels folded into the lane axis
    # w1t_ref: (C, HID)   = Conv2d(C->HID, 1).weight transposed
    # w2_ref : (C, HID)   = Conv2d(HID->C, 1).weight
    x = x_ref[...]
    xf = x.astype(jnp.float32)                 # all math in f32 (v5e has no bf16 VPU/EUP)
    C, HID = w1t_ref.shape
    CHW = x.shape[-1]
    HW = CHW // C
    inv_hw = 1.0 / float(HW)
    Bb = x.shape[0]

    # ---- pass 1: per-channel global avg/max pool + first 1x1 conv (accumulate over c) ----
    chunks = []
    h_avg = jnp.zeros((Bb, HID), jnp.float32)
    h_max = jnp.zeros((Bb, HID), jnp.float32)
    for c in range(C):                                           # C is small & static
        chunk = xf[:, c * HW:(c + 1) * HW]                       # (Bb, HW) 128-aligned slice
        chunks.append(chunk)
        s_c = jnp.sum(chunk, axis=-1, keepdims=True) * inv_hw    # (Bb, 1) avg pool
        m_c = jnp.max(chunk, axis=-1, keepdims=True)             # (Bb, 1) max pool
        w1_c = w1t_ref[c:c + 1, :]                               # (1, HID) column c of w1
        h_avg = h_avg + s_c * w1_c
        h_max = h_max + m_c * w1_c
    h_avg = jnp.maximum(h_avg, 0.0)                              # ReLU
    h_max = jnp.maximum(h_max, 0.0)

    # ---- pass 2: second 1x1 conv, double sigmoid, fused gate multiply + aligned store ----
    for c in range(C):
        w2_c = w2_ref[c:c + 1, :]                                # (1, HID)
        o_avg = jnp.sum(h_avg * w2_c, axis=-1, keepdims=True)    # (Bb, 1)
        o_max = jnp.sum(h_max * w2_c, axis=-1, keepdims=True)    # (Bb, 1)
        f_att = _sigmoid(o_avg) + _sigmoid(o_max)                # att(...) ends in Sigmoid
        scale = _sigmoid(f_att)                                  # module's self.out Sigmoid
        o_ref[:, c * HW:(c + 1) * HW] = (chunks[c] * scale).astype(o_ref.dtype)


def channel_attention(x, w1, w2, *, block_b=None, vmem_limit_bytes=48 * 1024 * 1024):
    B, C, H, W = x.shape
    HW = H * W
    HID = w1.shape[0]
    assert w1.shape == (HID, C) and w2.shape == (C, HID)

    x2 = x.reshape(B, C * HW)          # free reshape: contiguous -> dense (sublane, lane) tiles
    w1t = jnp.transpose(w1)            # (C, HID), tiny

    itemsize = jnp.dtype(x.dtype).itemsize
    sub = max(8, 32 // itemsize)       # sublane multiple: 8 (f32), 16 (bf16), 32 (int8)
    row_bytes = C * HW * itemsize

    if block_b is None:
        target_rows = max(1, (4 << 20) // row_bytes)   # ~4 MiB of input per grid step
        if B <= sub:
            block_b = B                # full batch extent satisfies the block-shape rule
        else:
            # smallest sublane-aligned block giving >=2 grid steps (v7x: 2 TensorCores)
            half = ((B + 1) // 2 + sub - 1) // sub * sub
            block_b = min(B, target_rows, half)
            block_b = max(sub, (block_b // sub) * sub)

    grid = (pl.cdiv(B, block_b),)      # partial last block OK: rows are fully independent

    grid_spec = pltpu.PrefetchScalarGridSpec(
        num_scalar_prefetch=0,
        grid=grid,
        in_specs=[
            pl.BlockSpec((block_b, C * HW), lambda b: (b, 0)),   # HW never tiled (pooling!)
            pl.BlockSpec((C, HID), lambda b: (0, 0)),
            pl.BlockSpec((C, HID), lambda b: (0, 0)),
        ],
        out_specs=pl.BlockSpec((block_b, C * HW), lambda b: (b, 0)),
    )
    out = pl.pallas_call(
        channel_attention_kernel,
        out_shape=jax.ShapeDtypeStruct((B, C * HW), x.dtype),
        grid_spec=grid_spec,
        compiler_params=pltpu.CompilerParams(
            dimension_semantics=("parallel",),      # batch rows independent -> megacore split
            vmem_limit_bytes=vmem_limit_bytes,      # raise v5e's 16 MiB default; < v7x 64 MiB
        ),
    )(x2, w1t, w2)
    return out.reshape(B, C, H, W)


def init_params(key, C, hid=N_HIDDENS):
    k1, k2 = jax.random.split(key)
    s = 0.1
    w1 = jax.random.normal(k1, (hid, C), jnp.float32) * s   # Conv2d(C, hid, 1, bias=False)
    w2 = jax.random.normal(k2, (C, hid), jnp.float32) * s   # Conv2d(hid, C, 1, bias=False)
    return w1, w2


def ref_forward(x, w1, w2):
    """Pure-JAX reference matching the PyTorch ChannelAttention forward."""
    sig = lambda v: 1.0 / (1.0 + jnp.exp(-v))
    avg = x.mean(axis=(2, 3))                       # (B, C)
    mx = x.max(axis=(2, 3))                         # (B, C)

    def mlp(v):
        h = jnp.maximum(v @ w1.T, 0.0)
        return sig(h @ w2.T)

    f_att = mlp(avg) + mlp(mx)
    return x * sig(f_att)[:, :, None, None]


if __name__ == "__main__":
    key = jax.random.PRNGKey(0)
    kx, kp, kx2 = jax.random.split(key, 3)

    # Small canonical shape.
    B, C, H, W = 2, 4, 16, 16
    x = jax.random.normal(kx, (B, C, H, W), jnp.float32)
    w1, w2 = init_params(kp, C)

    y = jax.block_until_ready(channel_attention(x, w1, w2))
    y_ref = ref_forward(x, w1, w2)
    assert jnp.allclose(y, y_ref, atol=1e-5, rtol=1e-5), \
        f"max abs err = {float(jnp.max(jnp.abs(y - y_ref)))}"

    # Exercise the cdiv / partial-last-block path (B=20 -> blocks of 16 + 4).
    xb = jax.random.normal(kx2, (20, C, H, W), jnp.float32)
    yb = jax.block_until_ready(channel_attention(xb, w1, w2))
    yb_ref = ref_forward(xb, w1, w2)
    assert jnp.allclose(yb, yb_ref, atol=1e-5, rtol=1e-5), \
        f"max abs err = {float(jnp.max(jnp.abs(yb - yb_ref)))}"

    print("KERNEL_OK")
</pallas_src>

<mosaic_0001>
module attributes {stable_mosaic.version = 11 : i64} {
  func.func @channel_attention_kernel(%arg0: i32, %arg1: memref<2x1024xf32, #tpu.memory_space<vmem>>, %arg2: memref<4x16xf32, #tpu.memory_space<vmem>>, %arg3: memref<4x16xf32, #tpu.memory_space<vmem>>, %arg4: memref<2x1024xf32, #tpu.memory_space<vmem>>) attributes {dimension_semantics = [#tpu.dimension_semantics<parallel>], iteration_bounds = array<i64: 1>, scalar_prefetch = 0 : i64, scratch_operands = 0 : i64, tpu.core_type = #tpu.core_type<tc>, window_params = [{transform_indices = @transform_0, window_bounds = array<i64: 2, 1024>}, {pipeline_mode = #tpu.pipeline_mode<synchronous>, transform_indices = @transform_1, window_bounds = array<i64: 4, 16>}, {pipeline_mode = #tpu.pipeline_mode<synchronous>, transform_indices = @transform_2, window_bounds = array<i64: 4, 16>}, {transform_indices = @transform_3, window_bounds = array<i64: 2, 1024>}]} {
    %c0 = arith.constant 0 : index
    %c0_0 = arith.constant 0 : index
    %0 = vector.load %arg1[%c0, %c0_0] : memref<2x1024xf32, #tpu.memory_space<vmem>>, vector<2x1024xf32>
    %cst = arith.constant 0.000000e+00 : f32
    %1 = vector.broadcast %cst : f32 to vector<2x16xf32>
    %cst_1 = arith.constant 0.000000e+00 : f32
    %2 = vector.broadcast %cst_1 : f32 to vector<2x16xf32>
    %3 = vector.extract_strided_slice %0 {offsets = [0, 0], sizes = [2, 256], strides = [1, 1]} : vector<2x1024xf32> to vector<2x256xf32>
    %cst_2 = arith.constant dense<0.000000e+00> : vector<2xf32>
    %4 = vector.multi_reduction <add>, %3, %cst_2 [1] : vector<2x256xf32> to vector<2xf32>
    %5 = vector.shape_cast %4 : vector<2xf32> to vector<2x1xf32>
    %cst_3 = arith.constant 3.906250e-03 : f32
    %6 = vector.broadcast %cst_3 : f32 to vector<2x1xf32>
    %7 = arith.mulf %5, %6 : vector<2x1xf32>
    %cst_4 = arith.constant dense<0xFF800000> : vector<2xf32>
    %8 = vector.multi_reduction <maximumf>, %3, %cst_4 [1] : vector<2x256xf32> to vector<2xf32>
    %9 = vector.shape_cast %8 : vector<2xf32> to vector<2x1xf32>
    %c0_5 = arith.constant 0 : index
    %c0_6 = arith.constant 0 : index
    %10 = vector.load %arg2[%c0_5, %c0_6] : memref<4x16xf32, #tpu.memory_space<vmem>>, vector<1x16xf32>
    %11 = vector.broadcast %7 : vector<2x1xf32> to vector<2x16xf32>
    %12 = vector.broadcast %10 : vector<1x16xf32> to vector<2x16xf32>
    %13 = arith.mulf %11, %12 : vector<2x16xf32>
    %14 = arith.addf %1, %13 : vector<2x16xf32>
    %15 = vector.broadcast %9 : vector<2x1xf32> to vector<2x16xf32>
    %16 = vector.broadcast %10 : vector<1x16xf32> to vector<2x16xf32>
    %17 = arith.mulf %15, %16 : vector<2x16xf32>
    %18 = arith.addf %2, %17 : vector<2x16xf32>
    %19 = vector.extract_strided_slice %0 {offsets = [0, 256], sizes = [2, 256], strides = [1, 1]} : vector<2x1024xf32> to vector<2x256xf32>
    %cst_7 = arith.constant dense<0.000000e+00> : vector<2xf32>
    %20 = vector.multi_reduction <add>, %19, %cst_7 [1] : vector<2x256xf32> to vector<2xf32>
    %21 = vector.shape_cast %20 : vector<2xf32> to vector<2x1xf32>
    %cst_8 = arith.constant 3.906250e-03 : f32
    %22 = vector.broadcast %cst_8 : f32 to vector<2x1xf32>
    %23 = arith.mulf %21, %22 : vector<2x1xf32>
    %cst_9 = arith.constant dense<0xFF800000> : vector<2xf32>
    %24 = vector.multi_reduction <maximumf>, %19, %cst_9 [1] : vector<2x256xf32> to vector<2xf32>
    %25 = vector.shape_cast %24 : vector<2xf32> to vector<2x1xf32>
    %c1 = arith.constant 1 : index
    %c0_10 = arith.constant 0 : index
    %26 = vector.load %arg2[%c1, %c0_10] : memref<4x16xf32, #tpu.memory_space<vmem>>, vector<1x16xf32>
    %27 = vector.broadcast %23 : vector<2x1xf32> to vector<2x16xf32>
    %28 = vector.broadcast %26 : vector<1x16xf32> to vector<2x16xf32>
    %29 = arith.mulf %27, %28 : vector<2x16xf32>
    %30 = arith.addf %14, %29 : vector<2x16xf32>
    %31 = vector.broadcast %25 : vector<2x1xf32> to vector<2x16xf32>
    %32 = vector.broadcast %26 : vector<1x16xf32> to vector<2x16xf32>
    %33 = arith.mulf %31, %32 : vector<2x16xf32>
    %34 = arith.addf %18, %33 : vector<2x16xf32>
    %35 = vector.extract_strided_slice %0 {offsets = [0, 512], sizes = [2, 256], strides = [1, 1]} : vector<2x1024xf32> to vector<2x256xf32>
    %cst_11 = arith.constant dense<0.000000e+00> : vector<2xf32>
    %36 = vector.multi_reduction <add>, %35, %cst_11 [1] : vector<2x256xf32> to vector<2xf32>
    %37 = vector.shape_cast %36 : vector<2xf32> to vector<2x1xf32>
    %cst_12 = arith.constant 3.906250e-03 : f32
    %38 = vector.broadcast %cst_12 : f32 to vector<2x1xf32>
    %39 = arith.mulf %37, %38 : vector<2x1xf32>
    %cst_13 = arith.constant dense<0xFF800000> : vector<2xf32>
    %40 = vector.multi_reduction <maximumf>, %35, %cst_13 [1] : vector<2x256xf32> to vector<2xf32>
    %41 = vector.shape_cast %40 : vector<2xf32> to vector<2x1xf32>
    %c2 = arith.constant 2 : index
    %c0_14 = arith.constant 0 : index
    %42 = vector.load %arg2[%c2, %c0_14] : memref<4x16xf32, #tpu.memory_space<vmem>>, vector<1x16xf32>
    %43 = vector.broadcast %39 : vector<2x1xf32> to vector<2x16xf32>
    %44 = vector.broadcast %42 : vector<1x16xf32> to vector<2x16xf32>
    %45 = arith.mulf %43, %44 : vector<2x16xf32>
    %46 = arith.addf %30, %45 : vector<2x16xf32>
    %47 = vector.broadcast %41 : vector<2x1xf32> to vector<2x16xf32>
    %48 = vector.broadcast %42 : vector<1x16xf32> to vector<2x16xf32>
    %49 = arith.mulf %47, %48 : vector<2x16xf32>
    %50 = arith.addf %34, %49 : vector<2x16xf32>
    %51 = vector.extract_strided_slice %0 {offsets = [0, 768], sizes = [2, 256], strides = [1, 1]} : vector<2x1024xf32> to vector<2x256xf32>
    %cst_15 = arith.constant dense<0.000000e+00> : vector<2xf32>
    %52 = vector.multi_reduction <add>, %51, %cst_15 [1] : vector<2x256xf32> to vector<2xf32>
    %53 = vector.shape_cast %52 : vector<2xf32> to vector<2x1xf32>
    %cst_16 = arith.constant 3.906250e-03 : f32
    %54 = vector.broadcast %cst_16 : f32 to vector<2x1xf32>
    %55 = arith.mulf %53, %54 : vector<2x1xf32>
    %cst_17 = arith.constant dense<0xFF800000> : vector<2xf32>
    %56 = vector.multi_reduction <maximumf>, %51, %cst_17 [1] : vector<2x256xf32> to vector<2xf32>
    %57 = vector.shape_cast %56 : vector<2xf32> to vector<2x1xf32>
    %c3 = arith.constant 3 : index
    %c0_18 = arith.constant 0 : index
    %58 = vector.load %arg2[%c3, %c0_18] : memref<4x16xf32, #tpu.memory_space<vmem>>, vector<1x16xf32>
    %59 = vector.broadcast %55 : vector<2x1xf32> to vector<2x16xf32>
    %60 = vector.broadcast %58 : vector<1x16xf32> to vector<2x16xf32>
    %61 = arith.mulf %59, %60 : vector<2x16xf32>
    %62 = arith.addf %46, %61 : vector<2x16xf32>
    %63 = vector.broadcast %57 : vector<2x1xf32> to vector<2x16xf32>
    %64 = vector.broadcast %58 : vector<1x16xf32> to vector<2x16xf32>
    %65 = arith.mulf %63, %64 : vector<2x16xf32>
    %66 = arith.addf %50, %65 : vector<2x16xf32>
    %cst_19 = arith.constant 0.000000e+00 : f32
    %67 = vector.broadcast %cst_19 : f32 to vector<2x16xf32>
    %68 = arith.maximumf %62, %67 : vector<2x16xf32>
    %cst_20 = arith.constant 0.000000e+00 : f32
    %69 = vector.broadcast %cst_20 : f32 to vector<2x16xf32>
    %70 = arith.maximumf %66, %69 : vector<2x16xf32>
    %c0_21 = arith.constant 0 : index
    %c0_22 = arith.constant 0 : index
    %71 = vector.load %arg3[%c0_21, %c0_22] : memref<4x16xf32, #tpu.memory_space<vmem>>, vector<1x16xf32>
    %72 = vector.broadcast %71 : vector<1x16xf32> to vector<2x16xf32>
    %73 = arith.mulf %68, %72 : vector<2x16xf32>
    %cst_23 = arith.constant dense<0.000000e+00> : vector<2xf32>
    %74 = vector.multi_reduction <add>, %73, %cst_23 [1] : vector<2x16xf32> to vector<2xf32>
    %75 = vector.shape_cast %74 : vector<2xf32> to vector<2x1xf32>
    %76 = vector.broadcast %71 : vector<1x16xf32> to vector<2x16xf32>
    %77 = arith.mulf %70, %76 : vector<2x16xf32>
    %cst_24 = arith.constant dense<0.000000e+00> : vector<2xf32>
    %78 = vector.multi_reduction <add>, %77, %cst_24 [1] : vector<2x16xf32> to vector<2xf32>
    %79 = vector.shape_cast %78 : vector<2xf32> to vector<2x1xf32>
    %cst_25 = arith.constant 0.000000e+00 : f32
    %80 = vector.broadcast %cst_25 : f32 to vector<2x1xf32>
    %81 = arith.subf %80, %75 : vector<2x1xf32>
    %82 = math.exp %81 : vector<2x1xf32>
    %cst_26 = arith.constant 1.000000e+00 : f32
    %83 = vector.broadcast %cst_26 : f32 to vector<2x1xf32>
    %84 = arith.addf %83, %82 : vector<2x1xf32>
    %cst_27 = arith.constant 1.000000e+00 : f32
    %85 = vector.broadcast %cst_27 : f32 to vector<2x1xf32>
    %86 = arith.divf %85, %84 : vector<2x1xf32>
    %cst_28 = arith.constant 0.000000e+00 : f32
    %87 = vector.broadcast %cst_28 : f32 to vector<2x1xf32>
    %88 = arith.subf %87, %79 : vector<2x1xf32>
    %89 = math.exp %88 : vector<2x1xf32>
    %cst_29 = arith.constant 1.000000e+00 : f32
    %90 = vector.broadcast %cst_29 : f32 to vector<2x1xf32>
    %91 = arith.addf %90, %89 : vector<2x1xf32>
    %cst_30 = arith.constant 1.000000e+00 : f32
    %92 = vector.broadcast %cst_30 : f32 to vector<2x1xf32>
    %93 = arith.divf %92, %91 : vector<2x1xf32>
    %94 = arith.addf %86, %93 : vector<2x1xf32>
    %cst_31 = arith.constant 0.000000e+00 : f32
    %95 = vector.broadcast %cst_31 : f32 to vector<2x1xf32>
    %96 = arith.subf %95, %94 : vector<2x1xf32>
    %97 = math.exp %96 : vector<2x1xf32>
    %cst_32 = arith.constant 1.000000e+00 : f32
    %98 = vector.broadcast %cst_32 : f32 to vector<2x1xf32>
    %99 = arith.addf %98, %97 : vector<2x1xf32>
    %cst_33 = arith.constant 1.000000e+00 : f32
    %100 = vector.broadcast %cst_33 : f32 to vector<2x1xf32>
    %101 = arith.divf %100, %99 : vector<2x1xf32>
    %102 = vector.broadcast %101 : vector<2x1xf32> to vector<2x256xf32>
    %103 = arith.mulf %3, %102 : vector<2x256xf32>
    %c0_34 = arith.constant 0 : index
    %c0_35 = arith.constant 0 : index
    %104 = vector.load %arg4[%c0_34, %c0_35] : memref<2x1024xf32, #tpu.memory_space<vmem>>, vector<2x256xf32>
    tpu.vector_store %arg4[%c0_34, %c0_35], %103 {strides = array<i32>} : memref<2x1024xf32, #tpu.memory_space<vmem>>, vector<2x256xf32>,
    %c1_36 = arith.constant 1 : index
    %c0_37 = arith.constant 0 : index
    %105 = vector.load %arg3[%c1_36, %c0_37] : memref<4x16xf32, #tpu.memory_space<vmem>>, vector<1x16xf32>
    %106 = vector.broadcast %105 : vector<1x16xf32> to vector<2x16xf32>
    %107 = arith.mulf %68, %106 : vector<2x16xf32>
    %cst_38 = arith.constant dense<0.000000e+00> : vector<2xf32>
    %108 = vector.multi_reduction <add>, %107, %cst_38 [1] : vector<2x16xf32> to vector<2xf32>
    %109 = vector.shape_cast %108 : vector<2xf32> to vector<2x1xf32>
    %110 = vector.broadcast %105 : vector<1x16xf32> to vector<2x16xf32>
    %111 = arith.mulf %70, %110 : vector<2x16xf32>
    %cst_39 = arith.constant dense<0.000000e+00> : vector<2xf32>
    %112 = vector.multi_reduction <add>, %111, %cst_39 [1] : vector<2x16xf32> to vector<2xf32>
    %113 = vector.shape_cast %112 : vector<2xf32> to vector<2x1xf32>
    %cst_40 = arith.constant 0.000000e+00 : f32
    %114 = vector.broadcast %cst_40 : f32 to vector<2x1xf32>
    %115 = arith.subf %114, %109 : vector<2x1xf32>
    %116 = math.exp %115 : vector<2x1xf32>
    %cst_41 = arith.constant 1.000000e+00 : f32
    %117 = vector.broadcast %cst_41 : f32 to vector<2x1xf32>
    %118 = arith.addf %117, %116 : vector<2x1xf32>
    %cst_42 = arith.constant 1.000000e+00 : f32
    %119 = vector.broadcast %cst_42 : f32 to vector<2x1xf32>
    %120 = arith.divf %119, %118 : vector<2x1xf32>
    %cst_43 = arith.constant 0.000000e+00 : f32
    %121 = vector.broadcast %cst_43 : f32 to vector<2x1xf32>
    %122 = arith.subf %121, %113 : vector<2x1xf32>
    %123 = math.exp %122 : vector<2x1xf32>
    %cst_44 = arith.constant 1.000000e+00 : f32
    %124 = vector.broadcast %cst_44 : f32 to vector<2x1xf32>
    %125 = arith.addf %124, %123 : vector<2x1xf32>
    %cst_45 = arith.constant 1.000000e+00 : f32
    %126 = vector.broadcast %cst_45 : f32 to vector<2x1xf32>
    %127 = arith.divf %126, %125 : vector<2x1xf32>
    %128 = arith.addf %120, %127 : vector<2x1xf32>
    %cst_46 = arith.constant 0.000000e+00 : f32
    %129 = vector.broadcast %cst_46 : f32 to vector<2x1xf32>
    %130 = arith.subf %129, %128 : vector<2x1xf32>
    %131 = math.exp %130 : vector<2x1xf32>
    %cst_47 = arith.constant 1.000000e+00 : f32
    %132 = vector.broadcast %cst_47 : f32 to vector<2x1xf32>
    %133 = arith.addf %132, %131 : vector<2x1xf32>
    %cst_48 = arith.constant 1.000000e+00 : f32
    %134 = vector.broadcast %cst_48 : f32 to vector<2x1xf32>
    %135 = arith.divf %134, %133 : vector<2x1xf32>
    %136 = vector.broadcast %135 : vector<2x1xf32> to vector<2x256xf32>
    %137 = arith.mulf %19, %136 : vector<2x256xf32>
    %c0_49 = arith.constant 0 : index
    %c256 = arith.constant 256 : index
    %138 = vector.load %arg4[%c0_49, %c256] : memref<2x1024xf32, #tpu.memory_space<vmem>>, vector<2x256xf32>
    tpu.vector_store %arg4[%c0_49, %c256], %137 {strides = array<i32>} : memref<2x1024xf32, #tpu.memory_space<vmem>>, vector<2x256xf32>,
    %c2_50 = arith.constant 2 : index
    %c0_51 = arith.constant 0 : index
    %139 = vector.load %arg3[%c2_50, %c0_51] : memref<4x16xf32, #tpu.memory_space<vmem>>, vector<1x16xf32>
    %140 = vector.broadcast %139 : vector<1x16xf32> to vector<2x16xf32>
    %141 = arith.mulf %68, %140 : vector<2x16xf32>
    %cst_52 = arith.constant dense<0.000000e+00> : vector<2xf32>
    %142 = vector.multi_reduction <add>, %141, %cst_52 [1] : vector<2x16xf32> to vector<2xf32>
    %143 = vector.shape_cast %142 : vector<2xf32> to vector<2x1xf32>
    %144 = vector.broadcast %139 : vector<1x16xf32> to vector<2x16xf32>
    %145 = arith.mulf %70, %144 : vector<2x16xf32>
    %cst_53 = arith.constant dense<0.000000e+00> : vector<2xf32>
    %146 = vector.multi_reduction <add>, %145, %cst_53 [1] : vector<2x16xf32> to vector<2xf32>
    %147 = vector.shape_cast %146 : vector<2xf32> to vector<2x1xf32>
    %cst_54 = arith.constant 0.000000e+00 : f32
    %148 = vector.broadcast %cst_54 : f32 to vector<2x1xf32>
    %149 = arith.subf %148, %143 : vector<2x1xf32>
    %150 = math.exp %149 : vector<2x1xf32>
    %cst_55 = arith.constant 1.000000e+00 : f32
    %151 = vector.broadcast %cst_55 : f32 to vector<2x1xf32>
    %152 = arith.addf %151, %150 : vector<2x1xf32>
    %cst_56 = arith.constant 1.000000e+00 : f32
    %153 = vector.broadcast %cst_56 : f32 to vector<2x1xf32>
    %154 = arith.divf %153, %152 : vector<2x1xf32>
    %cst_57 = arith.constant 0.000000e+00 : f32
    %155 = vector.broadcast %cst_57 : f32 to vector<2x1xf32>
    %156 = arith.subf %155, %147 : vector<2x1xf32>
    %157 = math.exp %156 : vector<2x1xf32>
    %cst_58 = arith.constant 1.000000e+00 : f32
    %158 = vector.broadcast %cst_58 : f32 to vector<2x1xf32>
    %159 = arith.addf %158, %157 : vector<2x1xf32>
    %cst_59 = arith.constant 1.000000e+00 : f32
    %160 = vector.broadcast %cst_59 : f32 to vector<2x1xf32>
    %161 = arith.divf %160, %159 : vector<2x1xf32>
    %162 = arith.addf %154, %161 : vector<2x1xf32>
    %cst_60 = arith.constant 0.000000e+00 : f32
    %163 = vector.broadcast %cst_60 : f32 to vector<2x1xf32>
    %164 = arith.subf %163, %162 : vector<2x1xf32>
    %165 = math.exp %164 : vector<2x1xf32>
    %cst_61 = arith.constant 1.000000e+00 : f32
    %166 = vector.broadcast %cst_61 : f32 to vector<2x1xf32>
    %167 = arith.addf %166, %165 : vector<2x1xf32>
    %cst_62 = arith.constant 1.000000e+00 : f32
    %168 = vector.broadcast %cst_62 : f32 to vector<2x1xf32>
    %169 = arith.divf %168, %167 : vector<2x1xf32>
    %170 = vector.broadcast %169 : vector<2x1xf32> to vector<2x256xf32>
    %171 = arith.mulf %35, %170 : vector<2x256xf32>
    %c0_63 = arith.constant 0 : index
    %c512 = arith.constant 512 : index
    %172 = vector.load %arg4[%c0_63, %c512] : memref<2x1024xf32, #tpu.memory_space<vmem>>, vector<2x256xf32>
    tpu.vector_store %arg4[%c0_63, %c512], %171 {strides = array<i32>} : memref<2x1024xf32, #tpu.memory_space<vmem>>, vector<2x256xf32>,
    %c3_64 = arith.constant 3 : index
    %c0_65 = arith.constant 0 : index
    %173 = vector.load %arg3[%c3_64, %c0_65] : memref<4x16xf32, #tpu.memory_space<vmem>>, vector<1x16xf32>
    %174 = vector.broadcast %173 : vector<1x16xf32> to vector<2x16xf32>
    %175 = arith.mulf %68, %174 : vector<2x16xf32>
    %cst_66 = arith.constant dense<0.000000e+00> : vector<2xf32>
    %176 = vector.multi_reduction <add>, %175, %cst_66 [1] : vector<2x16xf32> to vector<2xf32>
    %177 = vector.shape_cast %176 : vector<2xf32> to vector<2x1xf32>
    %178 = vector.broadcast %173 : vector<1x16xf32> to vector<2x16xf32>
    %179 = arith.mulf %70, %178 : vector<2x16xf32>
    %cst_67 = arith.constant dense<0.000000e+00> : vector<2xf32>
    %180 = vector.multi_reduction <add>, %179, %cst_67 [1] : vector<2x16xf32> to vector<2xf32>
    %181 = vector.shape_cast %180 : vector<2xf32> to vector<2x1xf32>
    %cst_68 = arith.constant 0.000000e+00 : f32
    %182 = vector.broadcast %cst_68 : f32 to vector<2x1xf32>
    %183 = arith.subf %182, %177 : vector<2x1xf32>
    %184 = math.exp %183 : vector<2x1xf32>
    %cst_69 = arith.constant 1.000000e+00 : f32
    %185 = vector.broadcast %cst_69 : f32 to vector<2x1xf32>
    %186 = arith.addf %185, %184 : vector<2x1xf32>
    %cst_70 = arith.constant 1.000000e+00 : f32
    %187 = vector.broadcast %cst_70 : f32 to vector<2x1xf32>
    %188 = arith.divf %187, %186 : vector<2x1xf32>
    %cst_71 = arith.constant 0.000000e+00 : f32
    %189 = vector.broadcast %cst_71 : f32 to vector<2x1xf32>
    %190 = arith.subf %189, %181 : vector<2x1xf32>
    %191 = math.exp %190 : vector<2x1xf32>
    %cst_72 = arith.constant 1.000000e+00 : f32
    %192 = vector.broadcast %cst_72 : f32 to vector<2x1xf32>
    %193 = arith.addf %192, %191 : vector<2x1xf32>
    %cst_73 = arith.constant 1.000000e+00 : f32
    %194 = vector.broadcast %cst_73 : f32 to vector<2x1xf32>
    %195 = arith.divf %194, %193 : vector<2x1xf32>
    %196 = arith.addf %188, %195 : vector<2x1xf32>
    %cst_74 = arith.constant 0.000000e+00 : f32
    %197 = vector.broadcast %cst_74 : f32 to vector<2x1xf32>
    %198 = arith.subf %197, %196 : vector<2x1xf32>
    %199 = math.exp %198 : vector<2x1xf32>
    %cst_75 = arith.constant 1.000000e+00 : f32
    %200 = vector.broadcast %cst_75 : f32 to vector<2x1xf32>
    %201 = arith.addf %200, %199 : vector<2x1xf32>
    %cst_76 = arith.constant 1.000000e+00 : f32
    %202 = vector.broadcast %cst_76 : f32 to vector<2x1xf32>
    %203 = arith.divf %202, %201 : vector<2x1xf32>
    %204 = vector.broadcast %203 : vector<2x1xf32> to vector<2x256xf32>
    %205 = arith.mulf %51, %204 : vector<2x256xf32>
    %c0_77 = arith.constant 0 : index
    %c768 = arith.constant 768 : index
    %206 = vector.load %arg4[%c0_77, %c768] : memref<2x1024xf32, #tpu.memory_space<vmem>>, vector<2x256xf32>
    tpu.vector_store %arg4[%c0_77, %c768], %205 {strides = array<i32>} : memref<2x1024xf32, #tpu.memory_space<vmem>>, vector<2x256xf32>,
    return
  }
  func.func @transform_0(%arg0: i32) -> (i32, i32) {
    %c0_i32 = arith.constant 0 : i32
    %c0_i32_0 = arith.constant 0 : i32
    return %arg0, %c0_i32 : i32, i32
  }
  func.func @transform_1(%arg0: i32) -> (i32, i32) {
    %c0_i32 = arith.constant 0 : i32
    %c0_i32_0 = arith.constant 0 : i32
    %c0_i32_1 = arith.constant 0 : i32
    return %c0_i32, %c0_i32_0 : i32, i32
  }
  func.func @transform_2(%arg0: i32) -> (i32, i32) {
    %c0_i32 = arith.constant 0 : i32
    %c0_i32_0 = arith.constant 0 : i32
    %c0_i32_1 = arith.constant 0 : i32
    return %c0_i32, %c0_i32_0 : i32, i32
  }
  func.func @transform_3(%arg0: i32) -> (i32, i32) {
    %c0_i32 = arith.constant 0 : i32
    %c0_i32_0 = arith.constant 0 : i32
    return %arg0, %c0_i32 : i32, i32
  }
}

</mosaic_0001>

<bundles_post_ra>
// kernel: tpu_custom_call.1
= control target key start
LH: loop header
LB: loop body
LE: loop exit
PB: predicated region body
PF: predicated region fallthrough
CT: control target
= control target key end

     0   :  { %8 = vsyncpa [#allocation3], 0  ;;  %s893_s0 = inlined_call_operand.hbm [shape: f32[2,1024], index: 0, kind: input, shape index: {}]   ;;  %s894_s1 = inlined_call_operand.hbm [shape: f32[4,16], index: 1, kind: input, shape index: {}]   ;;  %s895_s2 = inlined_call_operand.hbm [shape: f32[4,16], index: 2, kind: input, shape index: {}]   ;;  %s896_s3 = inlined_call_operand.hbm [shape: f32[2,1024], index: 3, kind: output, shape index: {}]  }
   0x1   :  { %9 = vsyncpa [#allocation6], 0  ;;  %s27_s14 = sshll.u32 %s894_s1, 4  ;;  %s28_s14 = int_to_ptr.hbm [resolvable:$true] %s27_s14 }
   0x2   :  { %10 = vsyncpa [#allocation4], 0  ;;  %s661_s15 = smov [#allocation5]   ;;  %s16_s19 = sshll.u32 %s893_s0, 4  ;;  %s17_s19 = int_to_ptr.hbm [resolvable:$true] %s16_s19 }
   0x3   :  { %s29_s16 = sshll.u32 %s661_s15, 4  ;;  %s662_s20 = smov [#allocation2]   ;;  %s30_s16 = int_to_ptr.vmem [resolvable:$true] %s29_s16 }
   0x4   :  { %32 = dma.hbm_to_vmem [thread:$0]  %s28_s14, 64, %s30_s16, [#allocation6]  }
   0x5   :  { %s18_s21 = sshll.u32 %s662_s20, 4  ;;  %s38_s24 = sshll.u32 %s895_s2, 4  ;;  %s19_s21 = int_to_ptr.vmem [resolvable:$true] %s18_s21  ;;  %s39_s24 = int_to_ptr.hbm [resolvable:$true] %s38_s24 }
   0x6   :  { %21 = dma.hbm_to_vmem [thread:$0]  %s17_s19, 256, %s19_s21, [#allocation3]  }
   0x7   :  { %s663_s1 = smov [#allocation7]  }
   0x8   :  { %s40_s25 = sshll.u32 %s663_s1, 4  ;;  %s41_s25 = int_to_ptr.vmem [resolvable:$true] %s40_s25 }
   0x9   :  { %43 = dma.hbm_to_vmem [thread:$0]  %s39_s24, 64, %s41_s25, [#allocation6]  }
   0xa   :  { %655 = dma.done.wait [#allocation3], 256  }
   0xb   :  { %656 = vsyncadd [#allocation3], 4294967040 }
   0xc   :  { %657 = dma.done.wait [#allocation6], 128  }
   0xd   :  { %658 = vsyncadd [#allocation6], 4294967168  ;;  %v695_v0 = vld [vmem:[#allocation2] sm:$0xff]  ;;  %vm64_vm0 = vcmask 1041408   ;;  %v707_v16 = vld [vmem:[#allocation2 + $0x8] sm:$0xff]  ;;  %vm174_vm1 = vcmask 123904  }
   0xe   :  { %59 = vst [vmem:[#allocation1] ss:$4 sm:$0xff] %v695_v0  ;;  %v503_v45 = vld [vmem:[#allocation5] ss:$0 sm:$0xff]  ;;  %v504_v47 = vld [vmem:[#allocation5 + $0x1] ss:$0 sm:$0xff] }
   0xf   :  { %v505_v52 = vld [vmem:[#allocation5 + $0x2] ss:$0 sm:$0xff]  ;;  %v506_v57 = vld [vmem:[#allocation5 + $0x3] ss:$0 sm:$0xff]  ;;  %s665_s0 = smov [#allocation8]   ;;  %s487_s28 = sshll.u32 %s896_s3, 4  ;;  %s488_s28 = int_to_ptr.hbm [resolvable:$true] %s487_s28 }
  0x10   :  { %s485_s2 = sshll.u32 %s665_s0, 4  ;;  %s486_s2 = int_to_ptr.vmem [resolvable:$true] %s485_s2 }
  0x15   :  { %v60_v1 = vld.sshfl [vmem:[#allocation1] sm:$0xff pattern:$0x73625140]  ;;  %v61_v2 = vld.sshfl [vmem:[#allocation1 + $0x8] sm:$0xff pattern:$0x73625140] }
  0x16   :  { %v65_v3 = vsel %vm64_vm0, %v60_v1, 0.0  ;;  %v66_v4 = vsel %vm64_vm0, %v61_v2, 0.0  ;;  %71 = vst [vmem:[#allocation1] ss:$4 sm:$0xff] %v695_v0 }
  0x17   :  { %v67_v5 = vadd.f32 %v66_v4, %v65_v3 }
  0x19   :  { %68 = vadd.xlane.f32.xlu0 %v67_v5  ;;  %v507_v5 = vld [vmem:[#allocation7 + $0x2] ss:$0 sm:$0xff] }
  0x1d   :  { %v72_v6 = vld.sshfl [vmem:[#allocation1] sm:$0xff pattern:$0x73625140]  ;;  %v73_v7 = vld.sshfl [vmem:[#allocation1 + $0x8] sm:$0xff pattern:$0x73625140] }
  0x1e   :  { %87 = vst [vmem:[#allocation1] ss:$4 sm:$0xff] %v695_v0  ;;  %v76_v8 = vsel %vm64_vm0, %v72_v6, -inf  ;;  %v77_v9 = vsel %vm64_vm0, %v73_v7, -inf  ;;  %v508_v6 = vld [vmem:[#allocation7 + $0x1] ss:$0 sm:$0xff] }
  0x1f   :  { %v78_v10 = vmax.f32 %v76_v8, %v77_v9  ;;  %v509_v7 = vld [vmem:[#allocation7] ss:$0 sm:$0xff] }
  0x21   :  { %79 = vmax.xlane.f32.xlu1 %v78_v10 }
  0x25   :  { %v88_v11 = vld.sshfl [vmem:[#allocation1 + $0x10] sm:$0xff pattern:$0x73625140]  ;;  %v89_v12 = vld.sshfl [vmem:[#allocation1 + $0x18] sm:$0xff pattern:$0x73625140] }
  0x26   :  { %v92_v13 = vsel %vm64_vm0, %v88_v11, 0.0  ;;  %v93_v14 = vsel %vm64_vm0, %v89_v12, 0.0  ;;  %98 = vst [vmem:[#allocation1] ss:$4 sm:$0xff] %v695_v0 }
  0x27   :  { %v94_v15 = vadd.f32 %v93_v14, %v92_v13 }
  0x29   :  { %95 = vadd.xlane.f32.xlu0 %v94_v15 }
  0x2d   :  { %v99_v17 = vld.sshfl [vmem:[#allocation1 + $0x10] sm:$0xff pattern:$0x73625140]  ;;  %v100_v18 = vld.sshfl [vmem:[#allocation1 + $0x18] sm:$0xff pattern:$0x73625140] }
  0x2e   :  { %115 = vst [vmem:[#allocation1] ss:$4 sm:$0xff] %v707_v16  ;;  %v103_v19 = vsel %vm64_vm0, %v99_v17, -inf  ;;  %v104_v20 = vsel %vm64_vm0, %v100_v18, -inf }
  0x2f   :  { %v105_v21 = vmax.f32 %v103_v19, %v104_v20 }
  0x31   :  { %106 = vmax.xlane.f32.xlu1 %v105_v21 }
  0x35   :  { %v116_v22 = vld.sshfl [vmem:[#allocation1] sm:$0xff pattern:$0x73625140]  ;;  %v117_v23 = vld.sshfl [vmem:[#allocation1 + $0x8] sm:$0xff pattern:$0x73625140] }
  0x36   :  { %v120_v24 = vsel %vm64_vm0, %v116_v22, 0.0  ;;  %v121_v25 = vsel %vm64_vm0, %v117_v23, 0.0  ;;  %126 = vst [vmem:[#allocation1] ss:$4 sm:$0xff] %v707_v16 }
  0x37   :  { %v122_v26 = vadd.f32 %v121_v25, %v120_v24 }
  0x39   :  { %123 = vadd.xlane.f32.xlu2 %v122_v26 }
  0x3d   :  { %v127_v27 = vld.sshfl [vmem:[#allocation1] sm:$0xff pattern:$0x73625140]  ;;  %v128_v28 = vld.sshfl [vmem:[#allocation1 + $0x8] sm:$0xff pattern:$0x73625140] }
  0x3e   :  { %v131_v29 = vsel %vm64_vm0, %v127_v27, -inf  ;;  %v132_v30 = vsel %vm64_vm0, %v128_v28, -inf  ;;  %142 = vst [vmem:[#allocation1] ss:$4 sm:$0xff] %v707_v16  ;;  %v510_v27 = vld [vmem:[#allocation7 + $0x3] ss:$0 sm:$0xff] }
  0x3f   :  { %v133_v31 = vmax.f32 %v131_v29, %v132_v30 }
  0x41   :  { %134 = vmax.xlane.f32.xlu2 %v133_v31 }
  0x45   :  { %v143_v32 = vld.sshfl [vmem:[#allocation1 + $0x10] sm:$0xff pattern:$0x73625140]  ;;  %v144_v33 = vld.sshfl [vmem:[#allocation1 + $0x18] sm:$0xff pattern:$0x73625140] }
  0x46   :  { %v147_v34 = vsel %vm64_vm0, %v143_v32, 0.0  ;;  %v148_v35 = vsel %vm64_vm0, %v144_v33, 0.0  ;;  %153 = vst [vmem:[#allocation1] ss:$4 sm:$0xff] %v707_v16 }
  0x47   :  { %v149_v36 = vadd.f32 %v148_v35, %v147_v34 }
  0x49   :  { %150 = vadd.xlane.f32.xlu0 %v149_v36 }
  0x4d   :  { %v154_v37 = vld.sshfl [vmem:[#allocation1 + $0x10] sm:$0xff pattern:$0x73625140]  ;;  %v155_v38 = vld.sshfl [vmem:[#allocation1 + $0x18] sm:$0xff pattern:$0x73625140] }
  0x4e   :  { %v158_v39 = vsel %vm64_vm0, %v154_v37, -inf  ;;  %v159_v40 = vsel %vm64_vm0, %v155_v38, -inf }
  0x4f   :  { %v160_v41 = vmax.f32 %v158_v39, %v159_v40 }
  0x51   :  { %161 = vmax.xlane.f32.xlu1 %v160_v41 }
  0x8c   :  { %v69_v42 = vpop.xlane.xlu0 %68 }
  0x8d   :  { %v70_v46 = vmul.f32 0.00390625, %v69_v42 }
  0x8f   :  { %v83_v50 = vmul.f32 %v503_v45, %v70_v46 }
  0x94   :  { %v80_v43 = vpop.xlane.xlu1 %79 }
  0x95   :  { %v85_v58 = vmul.f32 %v503_v45, %v80_v43 }
  0x9c   :  { %v96_v44 = vpop.xlane.xlu0 %95 }
  0x9d   :  { %v97_v48 = vmul.f32 0.00390625, %v96_v44 }
  0x9f   :  { %v110_v51 = vmul.f32 %v504_v47, %v97_v48 }
  0xa1   :  { %v111_v55 = vadd.f32 %v110_v51, %v83_v50 }
  0xa4   :  { %v107_v54 = vpop.xlane.xlu1 %106 }
  0xa5   :  { %v112_v59 = vmul.f32 %v504_v47, %v107_v54 }
  0xa7   :  { %v113_v2 = vadd.f32 %v112_v59, %v85_v58 }
  0xac   :  { %v124_v49 = vpop.xlane.xlu2 %123 }
  0xad   :  { %v125_v53 = vmul.f32 0.00390625, %v124_v49 }
  0xaf   :  { %v138_v56 = vmul.f32 %v505_v52, %v125_v53 }
  0xb1   :  { %v139_v63 = vadd.f32 %v138_v56, %v111_v55 }
  0xb4   :  { %v135_v61 = vpop.xlane.xlu2 %134 }
  0xb5   :  { %v140_v3 = vmul.f32 %v505_v52, %v135_v61 }
  0xb7   :  { %v141_v9 = vadd.f32 %v140_v3, %v113_v2 }
  0xbc   :  { %v151_v60 = vpop.xlane.xlu0 %150 }
  0xbd   :  { %v152_v62 = vmul.f32 0.00390625, %v151_v60 }
  0xbf   :  { %v165_v1 = vmul.f32 %v506_v57, %v152_v62 }
  0xc1   :  { %v166_v4 = vadd.f32 %v165_v1, %v139_v63 }
  0xc3   :  { %v169_v8 = vmax.f32 %v166_v4, 0.0 }
  0xc4   :  { %v162_v10 = vpop.xlane.xlu1 %161 }
  0xc5   :  { %v167_v11 = vmul.f32 %v506_v57, %v162_v10  ;;  %v328_v12 = vmul.f32 %v507_v5, %v169_v8  ;;  %v250_v13 = vmul.f32 %v508_v6, %v169_v8  ;;  %v173_v14 = vmul.f32 %v509_v7, %v169_v8 }
  0xc6   :  { %v404_v29 = vmul.f32 %v510_v27, %v169_v8 }
  0xc7   :  { %v168_v15 = vadd.f32 %v167_v11, %v141_v9  ;;  %v329_v17 = vsel %vm174_vm1, %v328_v12, 0.0  ;;  %v251_v18 = vsel %vm174_vm1, %v250_v13, 0.0  ;;  %v175_v19 = vsel %vm174_vm1, %v173_v14, 0.0 }
  0xc8   :  { %330 = vadd.xlane.f32.xlu0 %v329_v17  ;;  %252 = vadd.xlane.f32.xlu1 %v251_v18  ;;  %v405_v31 = vsel %vm174_vm1, %v404_v29, 0.0 }
  0xc9   :  { %v170_v20 = vmax.f32 %v168_v15, 0.0  ;;  %176 = vadd.xlane.f32.xlu2 %v175_v19 }
  0xcb   :  { %v178_v21 = vmul.f32 %v509_v7, %v170_v20  ;;  %v332_v22 = vmul.f32 %v507_v5, %v170_v20  ;;  %v254_v23 = vmul.f32 %v508_v6, %v170_v20  ;;  %v408_v28 = vmul.f32 %v510_v27, %v170_v20 }
  0xcd   :  { %v179_v24 = vsel %vm174_vm1, %v178_v21, 0.0  ;;  %v333_v25 = vsel %vm174_vm1, %v332_v22, 0.0  ;;  %v255_v26 = vsel %vm174_vm1, %v254_v23, 0.0  ;;  %v409_v30 = vsel %vm174_vm1, %v408_v28, 0.0 }
  0xd0   :  { %180 = vadd.xlane.f32.xlu0 %v179_v24  ;;  %334 = vadd.xlane.f32.xlu1 %v333_v25 }
  0xd1   :  { %256 = vadd.xlane.f32.xlu2 %v255_v26 }
  0xd8   :  { %410 = vadd.xlane.f32.xlu0 %v409_v30 }
  0xd9   :  { %406 = vadd.xlane.f32.xlu2 %v405_v31 }
 0x13b   :  { %v331_v32 = vpop.xlane.xlu0 %330  ;;  %v253_v33 = vpop.xlane.xlu1 %252 }
 0x13c   :  { %v336_v34 = vsub.f32 0.0, %v331_v32  ;;  %v258_v35 = vsub.f32 0.0, %v253_v33  ;;  %v177_v36 = vpop.xlane.xlu2 %176 }
 0x13d   :  { %v182_v37 = vsub.f32 0.0, %v177_v36 }
 0x13e   :  { %v337_v38 = vmul.f32 1.442695, %v336_v34  ;;  %v259_v39 = vmul.f32 1.442695, %v258_v35 }
 0x13f   :  { %v183_v40 = vmul.f32 1.442695, %v182_v37 }
 0x140   :  { %511 = vpow2.f32 %v337_v38 }
 0x141   :  { %513 = vpow2.f32 %v259_v39 }
 0x142   :  { %515 = vpow2.f32 %v183_v40 }
 0x143   :  { %v181_v41 = vpop.xlane.xlu0 %180  ;;  %v335_v42 = vpop.xlane.xlu1 %334 }
 0x144   :  { %v201_v43 = vsub.f32 0.0, %v181_v41  ;;  %v355_v44 = vsub.f32 0.0, %v335_v42  ;;  %v257_v45 = vpop.xlane.xlu2 %256 }
 0x145   :  { %v277_v46 = vsub.f32 0.0, %v257_v45 }
 0x146   :  { %v512_v47 = vpop.eup %511  ;;  %v202_v48 = vmul.f32 1.442695, %v201_v43  ;;  %v356_v51 = vmul.f32 1.442695, %v355_v44 }
 0x147   :  { %v514_v49 = vpop.eup %513  ;;  %v731_v50 = vadd.f32 1.0, %v512_v47  ;;  %v278_v54 = vmul.f32 1.442695, %v277_v46 }
 0x148   :  { %v516_v52 = vpop.eup %515  ;;  %v733_v53 = vadd.f32 1.0, %v514_v49  ;;  %517 = vpow2.f32 %v202_v48 }
 0x149   :  { %519 = vrcp.f32 %v731_v50  ;;  %v737_v55 = vadd.f32 1.0, %v516_v52  ;;  %v351_v7 = vand.u32 2147483648, %v731_v50  ;;  %vm345_vm2 = vweird.f32 %v731_v50 }
 0x14a   :  { %521 = vrcp.f32 %v733_v53  ;;  %v273_v8 = vand.u32 2147483648, %v733_v53  ;;  %v349_v15 = vand.u32 2147483647, %v731_v50  ;;  %v271_v20 = vand.u32 2147483647, %v733_v53 }
 0x14b   :  { %523 = vpow2.f32 %v356_v51  ;;  %v411_v56 = vpop.xlane.xlu0 %410  ;;  %v195_v14 = vand.u32 2147483647, %v737_v55  ;;  %v197_v18 = vand.u32 2147483648, %v737_v55  ;;  %v766_v19 = vor.u32 1.1754944e-38, %v351_v7 }
 0x14c   :  { %525 = vpow2.f32 %v278_v54  ;;  %v431_v57 = vsub.f32 0.0, %v411_v56  ;;  %v407_v58 = vpop.xlane.xlu2 %406  ;;  %v769_v21 = vor.u32 1.1754944e-38, %v273_v8  ;;  %vm267_vm3 = vweird.f32 %v733_v53 }
 0x14d   :  { %527 = vrcp.f32 %v737_v55  ;;  %v412_v61 = vsub.f32 0.0, %v407_v58  ;;  %vm191_vm4 = vweird.f32 %v737_v55  ;;  %vm777_vm5 = vcmp.eq.f32.partialorder %v195_v14, 8.507059e+37 }
 0x14e   :  { %v518_v59 = vpop.eup %517  ;;  %v432_v60 = vmul.f32 1.442695, %v431_v57  ;;  %v198_v33 = vor.u32 1.1754944e-38, %v197_v18  ;;  %vm786_vm8 = vcmp.eq.f32.partialorder %v349_v15, 8.507059e+37  ;;  %vm802_vm12 = vcmp.eq.f32.partialorder %v271_v20, 8.507059e+37 }
 0x14f   :  { %v740_v62 = vpop.eup %519  ;;  %v742_v63 = vadd.f32 1.0, %v518_v59  ;;  %v413_v3 = vmul.f32 1.442695, %v412_v61 }
 0x150   :  { %v744_v1 = vpop.eup %521  ;;  %v341_v2 = vmul.f32 %v740_v62, %v731_v50  ;;  %vm346_vm6 = vweird.f32 %v740_v62 }
 0x151   :  { %v524_v4 = vpop.eup %523  ;;  %v263_v5 = vmul.f32 %v744_v1, %v733_v53  ;;  %529 = vrcp.f32 %v742_v63  ;;  %v214_v25 = vand.u32 2147483647, %v742_v63  ;;  %v216_v30 = vand.u32 2147483648, %v742_v63  ;;  %vm823_vm0 = vmor %vm345_vm2, %vm346_vm6 }
 0x152   :  { %v526_v6 = vpop.eup %525  ;;  %v753_v9 = vadd.f32 1.0, %v524_v4  ;;  %531 = vpow2.f32 %v432_v60  ;;  %v342_v11 = vsub.f32 1.0, %v341_v2  ;;  %vm268_vm7 = vweird.f32 %v744_v1 }
 0x153   :  { %v755_v10 = vpop.eup %527  ;;  %v757_v12 = vadd.f32 1.0, %v526_v6  ;;  %533 = vpow2.f32 %v413_v3  ;;  %v264_v17 = vsub.f32 1.0, %v263_v5  ;;  %vm210_vm10 = vweird.f32 %v742_v63  ;;  %vm844_vm2 = vmor %vm267_vm3, %vm268_vm7 }
 0x154   :  { %v187_v13 = vmul.f32 %v755_v10, %v737_v55  ;;  %535 = vrcp.f32 %v753_v9  ;;  %v343_v24 = vmul.f32 %v740_v62, %v342_v11  ;;  %vm192_vm9 = vweird.f32 %v755_v10 }
 0x155   :  { %537 = vrcp.f32 %v757_v12  ;;  %v265_v32 = vmul.f32 %v744_v1, %v264_v17  ;;  %vm794_vm11 = vcmp.eq.f32.partialorder %v214_v25, 8.507059e+37  ;;  %v217_v44 = vor.u32 1.1754944e-38, %v216_v30  ;;  %vm812_vm14 = vmor %vm191_vm4, %vm192_vm9 }
 0x156   :  { %v188_v22 = vsub.f32 1.0, %v187_v13  ;;  %v344_v38 = vadd.f32 %v740_v62, %v343_v24  ;;  %vm364_vm15 = vweird.f32 %v753_v9  ;;  %v368_v49 = vand.u32 2147483647, %v753_v9 }
 0x157   :  { %v530_v23 = vpop.eup %529  ;;  %v266_v47 = vadd.f32 %v744_v1, %v265_v32  ;;  %v370_v50 = vand.u32 2147483648, %v753_v9  ;;  %v290_v58 = vand.u32 2147483647, %v757_v12  ;;  %v292_v53 = vand.u32 2147483648, %v757_v12 }
 0x158   :  { %v532_v26 = vpop.eup %531  ;;  %v189_v27 = vmul.f32 %v755_v10, %v188_v22  ;;  %v206_v29 = vmul.f32 %v530_v23, %v742_v63  ;;  %vm211_vm13 = vweird.f32 %v530_v23  ;;  %v348_v57 = vsel %vm823_vm0, %v740_v62, %v344_v38 }
 0x159   :  { %v534_v31 = vpop.eup %533  ;;  %v798_v40 = vadd.f32 1.0, %v532_v26  ;;  %vm212_vm1 = vmor %vm210_vm10, %vm211_vm13  ;;  %v270_v63 = vsel %vm844_vm2, %v744_v1, %v266_v47  ;;  %v353_v8 = vsel %vm786_vm8, %v766_v19, %v348_v57  ;;  %vm369_vm7 = vcmp.eq.f32.partialorder %v368_v49, 8.507059e+37 }
 0x15a   :  { %v190_v35 = vadd.f32 %v755_v10, %v189_v27  ;;  %v207_v36 = vsub.f32 1.0, %v206_v29  ;;  %v536_v37 = vpop.eup %535  ;;  %v800_v41 = vadd.f32 1.0, %v534_v31  ;;  %v371_v1 = vor.u32 1.1754944e-38, %v370_v50 }
 0x15b   :  { %v360_v45 = vmul.f32 %v536_v37, %v753_v9  ;;  %v538_v46 = vpop.eup %537  ;;  %539 = vrcp.f32 %v798_v40  ;;  %vm365_vm4 = vweird.f32 %v536_v37  ;;  %v275_v17 = vsel %vm802_vm12, %v769_v21, %v270_v63 }
 0x15c   :  { %v208_v43 = vmul.f32 %v530_v23, %v207_v36  ;;  %v194_v52 = vsel %vm812_vm14, %v755_v10, %v190_v35  ;;  %v282_v56 = vmul.f32 %v538_v46, %v757_v12  ;;  %541 = vrcp.f32 %v800_v41  ;;  %vm366_vm6 = vmor %vm364_vm15, %vm365_vm4 }
 0x15d   :  { %v361_v55 = vsub.f32 1.0, %v360_v45  ;;  %v199_v2 = vsel %vm777_vm5, %v198_v33, %v194_v52  ;;  %vm287_vm3 = vweird.f32 %v538_v46  ;;  %vm286_vm5 = vweird.f32 %v757_v12 }
 0x15e   :  { %v209_v54 = vadd.f32 %v530_v23, %v208_v43  ;;  %v283_v62 = vsub.f32 1.0, %v282_v56  ;;  %vm288_vm9 = vmor %vm286_vm5, %vm287_vm3  ;;  %vm291_vm8 = vcmp.eq.f32.partialorder %v290_v58, 8.507059e+37  ;;  %v293_v19 = vor.u32 1.1754944e-38, %v292_v53 }
 0x15f   :  { %v362_v61 = vmul.f32 %v536_v37, %v361_v55  ;;  %v446_v12 = vand.u32 2147483648, %v798_v40  ;;  %v444_v21 = vand.u32 2147483647, %v798_v40  ;;  %v427_v33 = vand.u32 2147483648, %v800_v41 }
 0x160   :  { %v213_v60 = vsel %vm212_vm1, %v530_v23, %v209_v54  ;;  %v284_v6 = vmul.f32 %v538_v46, %v283_v62  ;;  %v425_v35 = vand.u32 2147483647, %v800_v41  ;;  %vm421_vm15 = vweird.f32 %v800_v41 }
 0x161   :  { %v218_v3 = vsel %vm794_vm11, %v217_v44, %v213_v60  ;;  %v363_v5 = vadd.f32 %v536_v37, %v362_v61  ;;  %v540_v7 = vpop.eup %539  ;;  %vm440_vm11 = vweird.f32 %v798_v40  ;;  %v447_v38 = vor.u32 1.1754944e-38, %v446_v12 }
 0x162   :  { %v220_v4 = vadd.f32 %v218_v3, %v199_v2  ;;  %v285_v13 = vadd.f32 %v538_v46, %v284_v6  ;;  %v436_v14 = vmul.f32 %v540_v7, %v798_v40  ;;  %v542_v15 = vpop.eup %541  ;;  %vm441_vm10 = vweird.f32 %v540_v7 }
 0x163   :  { %v367_v11 = vsel %vm366_vm6, %v536_v37, %v363_v5  ;;  %v417_v25 = vmul.f32 %v542_v15, %v800_v41  ;;  %vm442_vm12 = vmor %vm440_vm11, %vm441_vm10  ;;  %vm422_vm13 = vweird.f32 %v542_v15  ;;  %vm445_vm14 = vcmp.eq.f32.partialorder %v444_v21, 8.507059e+37 }
 0x164   :  { %v221_v10 = vsub.f32 0.0, %v220_v4  ;;  %v372_v18 = vsel %vm369_vm7, %v371_v1, %v367_v11  ;;  %v289_v22 = vsel %vm288_vm9, %v538_v46, %v285_v13  ;;  %v437_v23 = vsub.f32 1.0, %v436_v14  ;;  %vm423_vm0 = vmor %vm421_vm15, %vm422_vm13 }
 0x165   :  { %v374_v20 = vadd.f32 %v372_v18, %v353_v8  ;;  %v294_v24 = vsel %vm291_vm8, %v293_v19, %v289_v22  ;;  %v418_v29 = vsub.f32 1.0, %v417_v25  ;;  %v428_v43 = vor.u32 1.1754944e-38, %v427_v33 }
 0x166   :  { %v222_v9 = vmul.f32 1.442695, %v221_v10  ;;  %v296_v27 = vadd.f32 %v294_v24, %v275_v17  ;;  %v438_v28 = vmul.f32 %v540_v7, %v437_v23  ;;  %vm426_vm1 = vcmp.eq.f32.partialorder %v425_v35, 8.507059e+37 }
 0x167   :  { %v375_v26 = vsub.f32 0.0, %v374_v20  ;;  %v419_v34 = vmul.f32 %v542_v15, %v418_v29  ;;  %v664_v50 = vmov 269488144   ;;  %v316_v21 = vrot.slane %v695_v0, 4 }
 0x168   :  { %543 = vpow2.f32 %v222_v9  ;;  %v297_v31 = vsub.f32 0.0, %v296_v27  ;;  %v439_v32 = vadd.f32 %v540_v7, %v438_v28  ;;  %v242_v58 = vunpack.c.l.s4 %v664_v50 }
 0x169   :  { %v376_v30 = vmul.f32 1.442695, %v375_v26  ;;  %v420_v39 = vadd.f32 %v542_v15, %v419_v34 }
 0x16a   :  { %v298_v36 = vmul.f32 1.442695, %v297_v31  ;;  %v443_v37 = vsel %vm442_vm12, %v540_v7, %v439_v32  ;;  %v877_v53 = vunpack.c.0.s8 %v242_v58 }
 0x16b   :  { %545 = vpow2.f32 %v376_v30  ;;  %v448_v42 = vsel %vm445_vm14, %v447_v38, %v443_v37  ;;  %v424_v45 = vsel %vm423_vm0, %v542_v15, %v420_v39 }
 0x16c   :  { %547 = vpow2.f32 %v298_v36  ;;  %v429_v46 = vsel %vm426_vm1, %v428_v43, %v424_v45  ;;  %v470_v43 = vrot.slane %v707_v16, 4 }
 0x16d   :  { %v450_v47 = vadd.f32 %v448_v42, %v429_v46 }
 0x16e   :  { %v544_v40 = vpop.eup %543 }
 0x16f   :  { %v224_v44 = vadd.f32 1.0, %v544_v40  ;;  %v451_v51 = vsub.f32 0.0, %v450_v47 }
 0x171   :  { %549 = vrcp.f32 %v224_v44  ;;  %v546_v48 = vpop.eup %545  ;;  %v452_v55 = vmul.f32 1.442695, %v451_v51  ;;  %v234_v57 = vand.u32 2147483647, %v224_v44  ;;  %v236_v60 = vand.u32 2147483648, %v224_v44 }
 0x172   :  { %v378_v49 = vadd.f32 1.0, %v546_v48  ;;  %v548_v52 = vpop.eup %547  ;;  %vm230_vm4 = vweird.f32 %v224_v44 }
 0x173   :  { %v300_v54 = vadd.f32 1.0, %v548_v52  ;;  %vm873_vm3 = vcmp.eq.f32.partialorder %v234_v57, 8.507059e+37  ;;  %v237_v6 = vor.u32 1.1754944e-38, %v236_v60 }
 0x174   :  { %551 = vrcp.f32 %v378_v49  ;;  %vm384_vm7 = vweird.f32 %v378_v49  ;;  %v388_v10 = vand.u32 2147483647, %v378_v49  ;;  %v390_v11 = vand.u32 2147483648, %v378_v49 }
 0x175   :  { %553 = vrcp.f32 %v300_v54  ;;  %v310_v18 = vand.u32 2147483647, %v300_v54  ;;  %v312_v19 = vand.u32 2147483648, %v300_v54  ;;  %vm306_vm8 = vweird.f32 %v300_v54 }
 0x176   :  { %555 = vpow2.f32 %v452_v55  ;;  %v391_v23 = vor.u32 1.1754944e-38, %v390_v11  ;;  %vm389_vm11 = vcmp.eq.f32.partialorder %v388_v10, 8.507059e+37 }
 0x177   :  { %v550_v56 = vpop.eup %549  ;;  %v313_v26 = vor.u32 1.1754944e-38, %v312_v19  ;;  %vm311_vm13 = vcmp.eq.f32.partialorder %v310_v18, 8.507059e+37 }
 0x178   :  { %v226_v41 = vmul.f32 %v550_v56, %v224_v44  ;;  %vm231_vm2 = vweird.f32 %v550_v56 }
 0x179   :  { %vm232_vm6 = vmor %vm230_vm4, %vm231_vm2 }
 0x17a   :  { %v227_v59 = vsub.f32 1.0, %v226_v41  ;;  %v552_v61 = vpop.eup %551 }
 0x17b   :  { %v380_v63 = vmul.f32 %v552_v61, %v378_v49  ;;  %v554_v2 = vpop.eup %553  ;;  %vm385_vm5 = vweird.f32 %v552_v61 }
 0x17c   :  { %v228_v62 = vmul.f32 %v550_v56, %v227_v59  ;;  %v556_v4 = vpop.eup %555  ;;  %v302_v7 = vmul.f32 %v554_v2, %v300_v54  ;;  %vm307_vm9 = vweird.f32 %v554_v2  ;;  %vm386_vm10 = vmor %vm384_vm7, %vm385_vm5 }
 0x17d   :  { %v381_v8 = vsub.f32 1.0, %v380_v63  ;;  %v454_v1 = vadd.f32 1.0, %v556_v4  ;;  %vm308_vm12 = vmor %vm306_vm8, %vm307_vm9 }
 0x17e   :  { %v229_v5 = vadd.f32 %v550_v56, %v228_v62  ;;  %v303_v14 = vsub.f32 1.0, %v302_v7 }
 0x17f   :  { %v382_v15 = vmul.f32 %v552_v61, %v381_v8  ;;  %557 = vrcp.f32 %v454_v1  ;;  %v466_v37 = vand.u32 2147483648, %v454_v1  ;;  %v464_v39 = vand.u32 2147483647, %v454_v1 }
 0x180   :  { %v233_v13 = vsel %vm232_vm6, %v550_v56, %v229_v5  ;;  %v304_v20 = vmul.f32 %v554_v2, %v303_v14  ;;  %vm460_vm15 = vweird.f32 %v454_v1 }
 0x181   :  { %v238_v17 = vsel %vm873_vm3, %v237_v6, %v233_v13  ;;  %v383_v22 = vadd.f32 %v552_v61, %v382_v15  ;;  %vm465_vm1 = vcmp.eq.f32.partialorder %v464_v39, 8.507059e+37 }
 0x182   :  { %v244_v9 = vperm.slane %v238_v17, %v877_v53  ;;  %v305_v12 = vadd.f32 %v554_v2, %v304_v20 }
 0x183   :  { %v387_v25 = vsel %vm386_vm10, %v552_v61, %v383_v22 }
 0x184   :  { %v246_v24 = vmul.f32 %v244_v9, %v695_v0  ;;  %v392_v27 = vsel %vm389_vm11, %v391_v23, %v387_v25  ;;  %v309_v28 = vsel %vm308_vm12, %v554_v2, %v305_v12  ;;  %v467_v0 = vor.u32 1.1754944e-38, %v466_v37 }
 0x185   :  { %v398_v29 = vperm.slane %v392_v27, %v877_v53  ;;  %v558_v30 = vpop.eup %557  ;;  %v314_v31 = vsel %vm311_vm13, %v313_v26, %v309_v28 }
 0x186   :  { %247 = vst [vmem:[#allocation8] sm:$0xf] %v246_v24  ;;  %v322_v32 = vperm.slane %v314_v31, %v877_v53  ;;  %v456_v34 = vmul.f32 %v558_v30, %v454_v1  ;;  %vm461_vm14 = vweird.f32 %v558_v30 }
 0x187   :  { %v400_v33 = vmul.f32 %v398_v29, %v707_v16  ;;  %vm462_vm0 = vmor %vm460_vm15, %vm461_vm14 }
 0x188   :  { %v324_v35 = vmul.f32 %v322_v32, %v316_v21  ;;  %v457_v36 = vsub.f32 1.0, %v456_v34 }
 0x189   :  { %401 = vst [vmem:[#allocation8 + $0x8] sm:$0xf] %v400_v33 }
 0x18a   :  { %325 = vst [vmem:[#allocation8 + $0x4] sm:$0xf] %v324_v35  ;;  %v458_v38 = vmul.f32 %v558_v30, %v457_v36 }
 0x18c   :  { %v459_v40 = vadd.f32 %v558_v30, %v458_v38 }
 0x18e   :  { %v463_v42 = vsel %vm462_vm0, %v558_v30, %v459_v40 }
 0x18f   :  { %v468_v44 = vsel %vm465_vm1, %v467_v0, %v463_v42 }
 0x190   :  { %v476_v45 = vperm.slane %v468_v44, %v877_v53 }
 0x192   :  { %v478_v46 = vmul.f32 %v476_v45, %v470_v43 }
 0x194   :  { %479 = vst [vmem:[#allocation8 + $0xc] sm:$0xf] %v478_v46 }
 0x195   :  { %490 = dma.vmem_to_hbm [thread:$0]  %s486_s2, 256, %s488_s28, [#allocation4]  }
 0x196   :  { %659 = dma.done.wait [#allocation4], 256  }
 0x197   :  { %660 = vsyncadd [#allocation4], 4294967040 }
 0x198   :  { %495 = vsyncpa [#allocation3], 1 }
 0x199   :  { %496 = vsyncpa [#allocation6], 1 }
 0x19a   :  { %497 = vsyncpa [#allocation4], 1 }

</bundles_post_ra>
